<compile_context>
chip_gen: v5e
topology: v5e:2x2
jax: 0.10.0
libtpu: 0.0.40
codegen_flags: <defaults>
</compile_context>

<pallas_src>
import jax
import jax.numpy as jnp
from jax.experimental import pallas as pl
from jax.experimental.pallas import tpu as pltpu


def _nmrl_kernel(a_ref, lab_ref, x_ref, wn_ref, wl_ref, b_ref, all_ref, gnm_ref):
    # One grid step == one graph b; all M node markings are handled in-body.
    a = a_ref[...]            # (N, N)  normalized adjacency of this graph
    labs = lab_ref[...]       # (M, L)  label features of all markings for this graph
    x = x_ref[...]            # (N, F)  shared node features

    # Node / label projections (each computed exactly once per graph).
    h = jnp.dot(x, wn_ref[...], preferred_element_type=jnp.float32)       # (N, D)
    lp = jnp.dot(labs, wl_ref[...], preferred_element_type=jnp.float32)   # (M, D)

    # A @ (h + 1_N lp[m]) == A @ h + rowsum(A) * lp[m]  (exact), so a single
    # (N,N)@(N,D) matmul covers all M markings; the marking-dependent part is a
    # cheap broadcast multiply-add on the VPU.
    ah = jnp.dot(a, h, preferred_element_type=jnp.float32)                # (N, D)
    arow = jnp.sum(a, axis=1, keepdims=True)                              # (N, 1)

    msg = ah[None, :, :] + arow[None, :, :] * lp[:, None, :]              # (M, N, D)
    rep = jnp.maximum(msg + b_ref[...][None, :, :], 0.0)                  # ReLU

    # all_repr: node representations, written as M dense (8,128) tiles.
    all_ref[...] = rep

    # g_nm_repr = dgl.sum_nodes(bg, 'repr'): per-(marking, graph) node sum,
    # written as one dense (M, D) slab.
    gnm_ref[...] = jnp.sum(rep, axis=1)                                   # (M, D)


def compute_nm_g_repr(adj, labels, node_feats, w_node, w_lab, bias):
    """Pallas implementation of NMRLModel.compute_NM_g_repr.

    adj:        (B, N, N)  float32 normalized adjacency per graph
    labels:     (M, B, L)  float32 label features per (node-marking, graph)
    node_feats: (N, F)     float32 node features (shared across graphs)
    w_node:     (F, D), w_lab: (L, D), bias: (1, D)

    Returns (all_repr (M*B*N, D), g_nm_repr (M*B, D), g_repr (B, D)).
    """
    B, N, _ = adj.shape
    M, _, L = labels.shape
    F = node_feats.shape[1]
    D = w_node.shape[1]

    # One dense (M, L) label block per graph.
    labels_bml = jnp.transpose(labels, (1, 0, 2))   # (B, M, L)

    out_shapes = (
        jax.ShapeDtypeStruct((M, B, N, D), jnp.float32),   # all_repr (DGL node order)
        jax.ShapeDtypeStruct((B, M, D), jnp.float32),      # g_nm per graph
    )

    grid_spec = pltpu.PrefetchScalarGridSpec(
        num_scalar_prefetch=0,
        grid=(B,),
        in_specs=[
            pl.BlockSpec((None, N, N), lambda b: (b, 0, 0)),   # adjacency A[b]
            pl.BlockSpec((None, M, L), lambda b: (b, 0, 0)),   # labels, all markings of b
            pl.BlockSpec((N, F), lambda b: (0, 0)),            # node features
            pl.BlockSpec((F, D), lambda b: (0, 0)),            # W_node
            pl.BlockSpec((L, D), lambda b: (0, 0)),            # W_lab
            pl.BlockSpec((1, D), lambda b: (0, 0)),            # bias
        ],
        out_specs=[
            pl.BlockSpec((M, None, N, D), lambda b: (0, b, 0, 0)),  # all_repr
            pl.BlockSpec((None, M, D), lambda b: (b, 0, 0)),        # g_nm_repr
        ],
    )

    all4, gnm_bmd = pl.pallas_call(
        _nmrl_kernel,
        out_shape=out_shapes,
        grid_spec=grid_spec,
        compiler_params=pltpu.CompilerParams(
            dimension_semantics=("parallel",)),
    )(adj, labels_bml, node_feats, w_node, w_lab, bias)

    # Flatten to the DGL node ordering: M graph-copies outer, B graphs, N nodes.
    all_repr = all4.reshape(M * B * N, D)
    g_nm_repr = jnp.transpose(gnm_bmd, (1, 0, 2)).reshape(M * B, D)
    # g_repr = g_nm_repr.view(M, B, -1).mean(0): trivial wrapper-side reduce.
    g_repr = jnp.mean(gnm_bmd, axis=1)
    return all_repr, g_nm_repr, g_repr


def _reference(adj, labels, node_feats, w_node, w_lab, bias):
    """Pure-JAX reference mirroring the PyTorch/DGL semantics."""
    M, B, L = labels.shape
    N, F = node_feats.shape
    h = node_feats @ w_node                                   # (N, D)
    lp = labels.reshape(M * B, L) @ w_lab                     # (M*B, D)
    pre = h[None, :, :] + lp[:, None, :]                      # (M*B, N, D)
    adj_rep = jnp.tile(adj, (M, 1, 1))                        # collate([g]*M)
    msg = jnp.einsum("gij,gjd->gid", adj_rep, pre)            # (M*B, N, D)
    rep = jnp.maximum(msg + bias[None, :, :], 0.0)
    all_repr = rep.reshape(M * B * N, -1)
    g_nm = rep.sum(axis=1)                                    # (M*B, D)
    g_repr = g_nm.reshape(M, B, -1).mean(axis=0)              # (B, D)
    return all_repr, g_nm, g_repr


if __name__ == "__main__":
    # Small deterministic problem: B=2 graphs, N=8 nodes, M=4 node markings,
    # label dim L=16, node-feature dim F=32, hidden dim D=128.
    B, N, M, L, F, D = 2, 8, 4, 16, 32, 128

    key = jax.random.PRNGKey(0)
    k_adj, k_lab, k_x, k_wn, k_wl, k_b = jax.random.split(key, 6)

    # Symmetric adjacency with self loops, row-normalized.
    raw = (jax.random.uniform(k_adj, (B, N, N)) > 0.5).astype(jnp.float32)
    sym = jnp.clip(raw + jnp.swapaxes(raw, 1, 2), 0.0, 1.0)
    adj = sym + jnp.eye(N, dtype=jnp.float32)[None]
    adj = adj / jnp.sum(adj, axis=-1, keepdims=True)

    labels = jax.random.normal(k_lab, (M, B, L), dtype=jnp.float32)
    node_feats = jax.random.normal(k_x, (N, F), dtype=jnp.float32)
    w_node = jax.random.normal(k_wn, (F, D), dtype=jnp.float32) * 0.1
    w_lab = jax.random.normal(k_wl, (L, D), dtype=jnp.float32) * 0.1
    bias = jax.random.normal(k_b, (1, D), dtype=jnp.float32) * 0.1

    all_repr, g_nm_repr, g_repr = compute_nm_g_repr(
        adj, labels, node_feats, w_node, w_lab, bias)
    jax.block_until_ready((all_repr, g_nm_repr, g_repr))

    ref_all, ref_gnm, ref_g = _reference(adj, labels, node_feats, w_node, w_lab, bias)
    assert jnp.allclose(all_repr, ref_all, atol=1e-4, rtol=1e-4)
    assert jnp.allclose(g_nm_repr, ref_gnm, atol=1e-4, rtol=1e-4)
    assert jnp.allclose(g_repr, ref_g, atol=1e-4, rtol=1e-4)

    # TODO(synk): abstract methods (forward/compute_q_val/return_action_q/
    # state_transition/eps_action) and the DGL GraphCollator / contexter are
    # interface plumbing with no tensor compute to port.
    print("KERNEL_OK")
</pallas_src>

<mosaic_0001>
module attributes {stable_mosaic.version = 11 : i64} {
  func.func @_nmrl_kernel(%arg0: i32, %arg1: memref<1x8x8xf32, #tpu.memory_space<vmem>>, %arg2: memref<1x4x16xf32, #tpu.memory_space<vmem>>, %arg3: memref<8x32xf32, #tpu.memory_space<vmem>>, %arg4: memref<32x128xf32, #tpu.memory_space<vmem>>, %arg5: memref<16x128xf32, #tpu.memory_space<vmem>>, %arg6: memref<1x128xf32, #tpu.memory_space<vmem>>, %arg7: memref<4x1x8x128xf32, #tpu.memory_space<vmem>>, %arg8: memref<1x4x128xf32, #tpu.memory_space<vmem>>) attributes {dimension_semantics = [#tpu.dimension_semantics<parallel>], iteration_bounds = array<i64: 2>, scalar_prefetch = 0 : i64, scratch_operands = 0 : i64, tpu.core_type = #tpu.core_type<tc>, window_params = [{transform_indices = @transform_0, window_bounds = array<i64: 1, 8, 8>}, {transform_indices = @transform_1, window_bounds = array<i64: 1, 4, 16>}, {pipeline_mode = #tpu.pipeline_mode<synchronous>, transform_indices = @transform_2, window_bounds = array<i64: 8, 32>}, {pipeline_mode = #tpu.pipeline_mode<synchronous>, transform_indices = @transform_3, window_bounds = array<i64: 32, 128>}, {pipeline_mode = #tpu.pipeline_mode<synchronous>, transform_indices = @transform_4, window_bounds = array<i64: 16, 128>}, {pipeline_mode = #tpu.pipeline_mode<synchronous>, transform_indices = @transform_5, window_bounds = array<i64: 1, 128>}, {transform_indices = @transform_6, window_bounds = array<i64: 4, 1, 8, 128>}, {transform_indices = @transform_7, window_bounds = array<i64: 1, 4, 128>}]} {
    %c0 = arith.constant 0 : index
    %c0_0 = arith.constant 0 : index
    %c0_1 = arith.constant 0 : index
    %0 = vector.load %arg1[%c0, %c0_0, %c0_1] : memref<1x8x8xf32, #tpu.memory_space<vmem>>, vector<1x8x8xf32>
    %1 = vector.shape_cast %0 : vector<1x8x8xf32> to vector<8x8xf32>
    %c0_2 = arith.constant 0 : index
    %c0_3 = arith.constant 0 : index
    %c0_4 = arith.constant 0 : index
    %2 = vector.load %arg2[%c0_2, %c0_3, %c0_4] : memref<1x4x16xf32, #tpu.memory_space<vmem>>, vector<1x4x16xf32>
    %3 = vector.shape_cast %2 : vector<1x4x16xf32> to vector<4x16xf32>
    %c0_5 = arith.constant 0 : index
    %c0_6 = arith.constant 0 : index
    %4 = vector.load %arg3[%c0_5, %c0_6] : memref<8x32xf32, #tpu.memory_space<vmem>>, vector<8x32xf32>
    %c0_7 = arith.constant 0 : index
    %c0_8 = arith.constant 0 : index
    %5 = vector.load %arg4[%c0_7, %c0_8] : memref<32x128xf32, #tpu.memory_space<vmem>>, vector<32x128xf32>
    %cst = arith.constant dense<0.000000e+00> : vector<8x128xf32>
    %6 = tpu.matmul %4, %5, %cst {dimension_numbers = #tpu.dot_dimension_numbers<[1], [0], [0], [1], [0, 0, 1, 1], [], []>} : vector<8x32xf32>, vector<32x128xf32>, vector<8x128xf32> -> vector<8x128xf32>
    %c0_9 = arith.constant 0 : index
    %c0_10 = arith.constant 0 : index
    %7 = vector.load %arg5[%c0_9, %c0_10] : memref<16x128xf32, #tpu.memory_space<vmem>>, vector<16x128xf32>
    %cst_11 = arith.constant dense<0.000000e+00> : vector<4x128xf32>
    %8 = tpu.matmul %3, %7, %cst_11 {dimension_numbers = #tpu.dot_dimension_numbers<[1], [0], [0], [1], [0, 0, 1, 1], [], []>} : vector<4x16xf32>, vector<16x128xf32>, vector<4x128xf32> -> vector<4x128xf32>
    %cst_12 = arith.constant dense<0.000000e+00> : vector<8x128xf32>
    %9 = tpu.matmul %1, %6, %cst_12 {dimension_numbers = #tpu.dot_dimension_numbers<[1], [0], [0], [1], [0, 0, 1, 1], [], []>} : vector<8x8xf32>, vector<8x128xf32>, vector<8x128xf32> -> vector<8x128xf32>
    %cst_13 = arith.constant dense<0.000000e+00> : vector<8xf32>
    %10 = vector.multi_reduction <add>, %1, %cst_13 [1] : vector<8x8xf32> to vector<8xf32>
    %11 = vector.shape_cast %10 : vector<8xf32> to vector<8x1xf32>
    %12 = vector.shape_cast %9 : vector<8x128xf32> to vector<1x8x128xf32>
    %13 = vector.shape_cast %11 : vector<8x1xf32> to vector<1x8x1xf32>
    %14 = vector.shape_cast %8 : vector<4x128xf32> to vector<4x1x128xf32>
    %15 = vector.broadcast %13 : vector<1x8x1xf32> to vector<4x8x128xf32>
    %16 = vector.broadcast %14 : vector<4x1x128xf32> to vector<4x8x128xf32>
    %17 = arith.mulf %15, %16 : vector<4x8x128xf32>
    %18 = vector.broadcast %12 : vector<1x8x128xf32> to vector<4x8x128xf32>
    %19 = arith.addf %18, %17 : vector<4x8x128xf32>
    %c0_14 = arith.constant 0 : index
    %c0_15 = arith.constant 0 : index
    %20 = vector.load %arg6[%c0_14, %c0_15] : memref<1x128xf32, #tpu.memory_space<vmem>>, vector<1x128xf32>
    %21 = vector.shape_cast %20 : vector<1x128xf32> to vector<1x1x128xf32>
    %22 = vector.broadcast %21 : vector<1x1x128xf32> to vector<4x8x128xf32>
    %23 = arith.addf %19, %22 : vector<4x8x128xf32>
    %cst_16 = arith.constant 0.000000e+00 : f32
    %24 = vector.broadcast %cst_16 : f32 to vector<4x8x128xf32>
    %25 = arith.maximumf %23, %24 : vector<4x8x128xf32>
    %c0_17 = arith.constant 0 : index
    %c0_18 = arith.constant 0 : index
    %c0_19 = arith.constant 0 : index
    %c0_20 = arith.constant 0 : index
    %26 = vector.load %arg7[%c0_17, %c0_18, %c0_19, %c0_20] : memref<4x1x8x128xf32, #tpu.memory_space<vmem>>, vector<4x1x8x128xf32>
    %27 = vector.shape_cast %26 : vector<4x1x8x128xf32> to vector<4x8x128xf32>
    %28 = vector.shape_cast %25 : vector<4x8x128xf32> to vector<4x1x8x128xf32>
    tpu.vector_store %arg7[%c0_17, %c0_18, %c0_19, %c0_20], %28 {strides = array<i32>} : memref<4x1x8x128xf32, #tpu.memory_space<vmem>>, vector<4x1x8x128xf32>,
    %cst_21 = arith.constant dense<0.000000e+00> : vector<4x128xf32>
    %29 = vector.multi_reduction <add>, %25, %cst_21 [1] : vector<4x8x128xf32> to vector<4x128xf32>
    %c0_22 = arith.constant 0 : index
    %c0_23 = arith.constant 0 : index
    %c0_24 = arith.constant 0 : index
    %30 = vector.load %arg8[%c0_22, %c0_23, %c0_24] : memref<1x4x128xf32, #tpu.memory_space<vmem>>, vector<1x4x128xf32>
    %31 = vector.shape_cast %30 : vector<1x4x128xf32> to vector<4x128xf32>
    %32 = vector.shape_cast %29 : vector<4x128xf32> to vector<1x4x128xf32>
    tpu.vector_store %arg8[%c0_22, %c0_23, %c0_24], %32 {strides = array<i32>} : memref<1x4x128xf32, #tpu.memory_space<vmem>>, vector<1x4x128xf32>,
    return
  }
  func.func @transform_0(%arg0: i32) -> (i32, i32, i32) {
    %c0_i32 = arith.constant 0 : i32
    %c0_i32_0 = arith.constant 0 : i32
    %c0_i32_1 = arith.constant 0 : i32
    return %arg0, %c0_i32, %c0_i32_0 : i32, i32, i32
  }
  func.func @transform_1(%arg0: i32) -> (i32, i32, i32) {
    %c0_i32 = arith.constant 0 : i32
    %c0_i32_0 = arith.constant 0 : i32
    %c0_i32_1 = arith.constant 0 : i32
    return %arg0, %c0_i32, %c0_i32_0 : i32, i32, i32
  }
  func.func @transform_2(%arg0: i32) -> (i32, i32) {
    %c0_i32 = arith.constant 0 : i32
    %c0_i32_0 = arith.constant 0 : i32
    %c0_i32_1 = arith.constant 0 : i32
    return %c0_i32, %c0_i32_0 : i32, i32
  }
  func.func @transform_3(%arg0: i32) -> (i32, i32) {
    %c0_i32 = arith.constant 0 : i32
    %c0_i32_0 = arith.constant 0 : i32
    %c0_i32_1 = arith.constant 0 : i32
    return %c0_i32, %c0_i32_0 : i32, i32
  }
  func.func @transform_4(%arg0: i32) -> (i32, i32) {
    %c0_i32 = arith.constant 0 : i32
    %c0_i32_0 = arith.constant 0 : i32
    %c0_i32_1 = arith.constant 0 : i32
    return %c0_i32, %c0_i32_0 : i32, i32
  }
  func.func @transform_5(%arg0: i32) -> (i32, i32) {
    %c0_i32 = arith.constant 0 : i32
    %c0_i32_0 = arith.constant 0 : i32
    %c0_i32_1 = arith.constant 0 : i32
    return %c0_i32, %c0_i32_0 : i32, i32
  }
  func.func @transform_6(%arg0: i32) -> (i32, i32, i32, i32) {
    %c0_i32 = arith.constant 0 : i32
    %c0_i32_0 = arith.constant 0 : i32
    %c0_i32_1 = arith.constant 0 : i32
    %c0_i32_2 = arith.constant 0 : i32
    return %c0_i32, %arg0, %c0_i32_0, %c0_i32_1 : i32, i32, i32, i32
  }
  func.func @transform_7(%arg0: i32) -> (i32, i32, i32) {
    %c0_i32 = arith.constant 0 : i32
    %c0_i32_0 = arith.constant 0 : i32
    %c0_i32_1 = arith.constant 0 : i32
    return %arg0, %c0_i32, %c0_i32_0 : i32, i32, i32
  }
}

</mosaic_0001>

<bundles_post_ra>
// kernel: tpu_custom_call.1
= control target key start
LH: loop header
LB: loop body
LE: loop exit
PB: predicated region body
PF: predicated region fallthrough
CT: control target
= control target key end

     0   :  { %s1385_s0 = inlined_call_operand.hbm [shape: f32[2,8,8], index: 0, kind: input, shape index: {}]   ;;  %s1386_s1 = inlined_call_operand.hbm [shape: f32[2,4,16], index: 1, kind: input, shape index: {}]   ;;  %s1387_s2 = inlined_call_operand.hbm [shape: f32[8,32], index: 2, kind: input, shape index: {}]   ;;  %s1388_s3 = inlined_call_operand.hbm [shape: f32[32,128], index: 3, kind: input, shape index: {}]   ;;  %s1389_s4 = inlined_call_operand.hbm [shape: f32[16,128], index: 4, kind: input, shape index: {}]   ;;  %s1390_s5 = inlined_call_operand.vmem [shape: f32[1,128], index: 5, kind: input, shape index: {}]   ;;  %s1391_s6 = inlined_call_operand.hbm [shape: f32[4,2,8,128], index: 6, kind: output, shape index: {0}]   ;;  %s1392_s7 = inlined_call_operand.hbm [shape: f32[2,4,128], index: 7, kind: output, shape index: {1}]  }
   0x1   :  { %1396 = sst [smem:[#allocation23_spill]] %s1387_s2 }
   0x2   :  { %1397 = sst [smem:[#allocation24_spill]] %s1388_s3 }
   0x3   :  { %1398 = sst [smem:[#allocation25_spill]] %s1389_s4 }
   0x4   :  { %13 = vsyncpa [#allocation3], 0 }
   0x5   :  { %15 = vsyncpa [#allocation3 + $0x1], 0 }
   0x6   :  { %16 = vsyncpa [#allocation6], 0 }
   0x7   :  { %18 = vsyncpa [#allocation6 + $0x1], 0 }
   0x8   :  { %19 = vsyncpa [#allocation9], 0 }
   0x9   :  { %20 = vsyncpa [#allocation4], 0 }
   0xa   :  { %22 = vsyncpa [#allocation4 + $0x1], 0 }
   0xb   :  { %23 = vsyncpa [#allocation13], 0 }
   0xc   :  { %25 = vsyncpa [#allocation13 + $0x1], 0  ;;  %s1170_s24 = smov 0   ;;  %s1172_s25 = smov 0  }
   0xd   :  { %s1174_s26 = smov 0   ;;  %s1176_s27 = smov 0  }
   0xe LB: > { %1399 = sst [smem:[#allocation20_spill]] %s1116_s26  ;;  %s1191_s28 = sadd.s32 4294967295, %s1120_s27   ;;  %s1120_s27 = sphi %s1176_s27, %s1412_s27   ;;  %s1116_s26 = sphi %s1174_s26, %s1414_s26   ;;  %s1112_s25 = sphi %s1172_s25, %s1416_s25   ;;  %s1108_s24 = sphi %s1170_s24, %s1415_s24  }
   0xf   : > { %s740_s29 = sadd.s32 4294967294, %s1120_s27   ;;  %p51_p0 = scmp.ne.s32.totalorder %s1112_s25, %s1108_s24 }
  0x10   : > { %p52_p1 = scmp.eq.s32.totalorder %s1191_s28, 0  ;;  %p185_p2 = scmp.eq.s32.totalorder %s1191_s28, 1 }
  0x11   : > { %p191_p3 = scmp.eq.s32.totalorder %s740_s29, 1  ;;  %p741_p5 = scmp.ge.s32.totalorder %s1120_s27, 1 }
  0x12   : > { %p1200_p4 = por %p52_p1, %p51_p0  ;;  %p224_p7 = scmp.lt.s32.totalorder %s1120_s27, 3 }
  0x13   : > { %p1205_p6 = por %p191_p3, %p51_p0  ;;  %s1402_s2 = sld [smem:[#allocation23_spill]] }
  0x14   : > { %p1213_p8 = pnand %p741_p5, %p224_p7  ;;  %s1122_s13 = smov [#allocation7]  }
  0x15   : > { %s238_s14 = sshll.u32 %s1122_s13, 4  ;;  %s1404_s3 = sld [smem:[#allocation24_spill]]  ;;  %s239_s14 = int_to_ptr.vmem [resolvable:$true] %s238_s14 }
  0x16   : > { %p787_p10 = pneg %p1213_p8  ;;  %s1123_s19 = smov [#allocation8]  }
  0x17   : > { %s249_s20 = sshll.u32 %s1123_s19, 4  ;;  %s1124_s21 = smov 128   ;;  %s250_s20 = int_to_ptr.vmem [resolvable:$true] %s249_s20 }
  0x18   : > { %p1225_p11 = pnand %p787_p10, %p52_p1  ;;  %s1125_s22 = smov 8  }
  0x19   : > { %s236_s11 = sshll.u32 %s1402_s2, 4  ;;  %s1406_s4 = sld [smem:[#allocation25_spill]]  ;;  %s237_s11 = int_to_ptr.hbm [resolvable:$true] %s236_s11 }
  0x1a   : > { %790 = dma.hbm_to_vmem [thread:$0]  (!%p1225_p11), %s237_s11, 128, %s239_s14, [#allocation6]  }
  0x1b   : > { %s247_s17 = sshll.u32 %s1404_s3, 4  ;;  %s1126_s10 = smov [#allocation10]   ;;  %s248_s17 = int_to_ptr.hbm [resolvable:$true] %s247_s17 }
  0x1c   : > { %793 = dma.hbm_to_vmem [thread:$0]  (!%p1225_p11), %s248_s17, 512, %s250_s20, [#allocation9], %s1124_s21, %s1124_s21, %s1125_s22  }
  0x1d   : > { %s263_s13 = sshll.u32 %s1126_s10, 4  ;;  %s1239_s11 = sadd.s32 1, %s1120_s27   ;;  %s264_s13 = int_to_ptr.vmem [resolvable:$true] %s263_s13 }
  0x1e   : > { %1407 = sst [smem:[#allocation21_spill]] %s1239_s11  ;;  %s35_s14 = ssub.s32 %s1120_s27, %s1239_s11 }
  0x1f   : > { %s261_s9 = sshll.u32 %s1406_s4, 4  ;;  %s38_s15 = sadd.s32 1, %s1116_s26  ;;  %s262_s9 = int_to_ptr.hbm [resolvable:$true] %s261_s9 }
  0x20   : > { %796 = dma.hbm_to_vmem [thread:$0]  (!%p1225_p11), %s262_s9, 256, %s264_s13, [#allocation9], %s1124_s21, %s1124_s21, %s1125_s22  }
  0x21   : > { %p36_p12 = scmp.eq.s32.totalorder %s35_s14, 0  ;;  %p45_p13 = scmp.ne.s32.totalorder %s1116_s26, %s1112_s25 }
  0x22   : > { %p46_p0 = scmp.eq.s32.totalorder %s1120_s27, 0  ;;  %p814_p3 = scmp.lt.s32.totalorder %s1120_s27, 2 }
  0x23   : > { %s1249_s16 = scalar_select %p36_p12, %s1116_s26, %s38_s15  }
  0x24   : > { %p47_p5 = por %p46_p0, %p45_p13  ;;  %p1253_p7 = por %p185_p2, %p45_p13 }
  0x25   : > { %1408 = sst [smem:[#allocation22_spill]] %s1249_s16  ;;  %s280_s18 = sand.u32 1, %s1116_s26  }
  0x26   : > { %s747_s19 = sshll.u32 %s1120_s27, 3  ;;  %s746_s20 = sshll.u32 %s280_s18, 3 }
  0x27   : > { %s288_s23 = scalar_lea.hbm %s1385_s0, %s747_s19  ;;  %s284_s9 = scalar_lea.vmem [#allocation2], %s746_s20 }
  0x28   : > { %s290_s29 = sshll.u32 %s288_s23, 4  ;;  %s292_s10 = sshll.u32 %s284_s9, 4  ;;  %s291_s29 = int_to_ptr.hbm [resolvable:$true] %s290_s29  ;;  %s293_s10 = int_to_ptr.vmem [resolvable:$true] %s292_s10 }
  0x29   : > { %p1264_p10 = pnand %p814_p3, %p47_p5  ;;  %s299_s14 = sand.u32 1, %s1120_s27  }
  0x2a   : > { %s748_s15 = sshll.u32 %s280_s18, 2  ;;  %s281_s2 = scalar_lea.sflag [#allocation3], %s280_s18 }
  0x2b   : > { %s950_s3 = sshra.s32 %s291_s29, 4  ;;  %p954_p11 = pneg %p1264_p10  ;;  %s951_s3 = int_to_ptr.hbm [resolvable:$true] %s950_s3 }
  0x2c   : > { %s952_s4 = scalar_lea.hbm %s951_s3, 8  ;;  %s957_s21 = scalar_lea.hbm %s1385_s0, 16 }
  0x2d   : > { %p953_p2 = scmp.ne.s32.totalorder %s951_s3, %s952_s4  ;;  %p958_p0 = scmp.lt.s32.totalorder %s951_s3, %s1385_s0 }
  0x2e   : > { %p959_p3 = scmp.lt.s32.totalorder %s957_s21, %s952_s4 }
  0x2f   : > { %p955_p12 = pnand %p954_p11, %p953_p2 }
  0x30   : > { %p960_p5 = por %p959_p3, %p958_p0 }
  0x31   : > { %p956_p13 = pneg %p955_p12 }
  0x33   : > { %p961_p9 = pnand %p960_p5, %p956_p13 }
  0x35   : > { %964 = shalt.err (!%p961_p9)
}
  0x36   : > { %800 = dma.hbm_to_vmem [thread:$0]  (!%p1264_p10), %s291_s29, 128, %s293_s10, %s281_s2  }
  0x37   : > { %s749_s18 = sshll.u32 %s1120_s27, 2  ;;  %s303_s9 = scalar_lea.vmem [#allocation5], %s748_s15 }
  0x38   : > { %s311_s16 = sshll.u32 %s303_s9, 4  ;;  %s307_s19 = scalar_lea.hbm %s1386_s1, %s749_s18  ;;  %s312_s16 = int_to_ptr.vmem [resolvable:$true] %s311_s16 }
  0x39   : > { %s309_s20 = sshll.u32 %s307_s19, 4  ;;  %s300_s3 = scalar_lea.sflag [#allocation6], %s299_s14  ;;  %s310_s20 = int_to_ptr.hbm [resolvable:$true] %s309_s20 }
  0x3a   : > { %s980_s4 = sshra.s32 %s310_s20, 4  ;;  %s987_s10 = scalar_lea.hbm %s1386_s1, 8  ;;  %s981_s4 = int_to_ptr.hbm [resolvable:$true] %s980_s4 }
  0x3b   : > { %s982_s21 = scalar_lea.hbm %s981_s4, 4  ;;  %p988_p13 = scmp.lt.s32.totalorder %s981_s4, %s1386_s1 }
  0x3c   : > { %p983_p9 = scmp.ne.s32.totalorder %s981_s4, %s982_s21  ;;  %p989_p0 = scmp.lt.s32.totalorder %s987_s10, %s982_s21 }
  0x3e   : > { %p985_p2 = pnand %p983_p9, %p954_p11  ;;  %p990_p3 = por %p989_p0, %p988_p13 }
  0x40   : > { %p986_p12 = pneg %p985_p2 }
  0x42   : > { %p991_p5 = pnand %p990_p3, %p986_p12 }
  0x44   : > { %994 = shalt.err (!%p991_p5)
}
  0x45   : > { %803 = dma.hbm_to_vmem [thread:$0]  (!%p1264_p10), %s310_s20, 64, %s312_s16, %s300_s3  }
  0x46   : > { %320 = sbr.rel (%p1213_p8) target bundleno = 379 (0x17b), region = 44  ;;  %s1300_s26 = sand.u32 (!%p1213_p8), 1, %s1112_s25  }
  0x47   : > { %s751_s11 = sshll.u32 (!%p1213_p8), %s1300_s26, 3  ;;  %s323_s14 = scalar_lea.sflag (!%p1213_p8), [#allocation3], %s1300_s26 }
  0x48   : > { %s326_s23 = scalar_lea.vmem (!%p1213_p8), [#allocation2], %s751_s11 }
  0x4b   : > { %1083 = dma.done.wait (%p1200_p4), %s323_s14, 128  }
  0x4c   : > { %1085 = vsyncadd (%p1200_p4), %s323_s14, 4294967168  ;;  %s332_s12 = sand.u32 1, %s1191_s28   ;;  %s752_s16 = sshll.u32 %s1300_s26, 2 }
  0x4d   : > { %s333_s13 = scalar_lea.sflag [#allocation6], %s332_s12  ;;  %s336_s18 = scalar_lea.vmem [#allocation5], %s752_s16 }
  0x4e   : > { %1087 = dma.done.wait (%p1200_p4), %s333_s13, 64  }
  0x4f   : > { %1089 = vsyncadd (%p1200_p4), %s333_s13, 4294967232 }
  0x50   : > { %1091 = dma.done.wait (%p52_p1), [#allocation6], 128  }
  0x51   : > { %1093 = vsyncadd (%p52_p1), [#allocation6], 4294967168 }
  0x52   : > { %1095 = dma.done.wait (%p52_p1), [#allocation9], 768  }
  0x53   : > { %1097 = vsyncadd (%p52_p1), [#allocation9], 4294966528  ;;  %v399_v0 = vld [vmem:[#allocation8 + $0x18] sm:$0xff]  ;;  %v398_v1 = vld [vmem:[#allocation8 + $0x10] sm:$0xff]  ;;  %vm400_vm0 = vcmask 261120   ;;  %vm426_vm1 = vcmask 130048  }
  0x54   : > { %416 = vmatpush.msra.mxu0 %v399_v0  ;;  %v425_v2 = vld [vmem:[#allocation10 + $0x8] sm:$0xff]  ;;  %v396_v4 = vld [vmem:[#allocation8] sm:$0xff]  ;;  %v395_v5 = vld [vmem:[#allocation7] sm:$0xff]  ;;  %vm450_vm2 = vcmask 64512   ;;  %s756_s30 = sshll.u32 %s1300_s26, 5  ;;  %s763_s20 = sshll.u32 %s1191_s28, 3 }
  0x55   : > { %v397_v3 = vld [vmem:[#allocation8 + $0x8] sm:$0xff]  ;;  %444 = vmatpush.msra.mxu1 %v425_v2  ;;  %v424_v6 = vld [vmem:[#allocation10] sm:$0xff]  ;;  %v394_v7 = vld [vmem:[%s336_s18] sm:$0xf]  ;;  %s565_s21 = scalar_lea.hbm %s1391_s6, %s763_s20  ;;  %s385_s2 = scalar_lea.vmem [#allocation11], %s756_s30 }
  0x56   : > { %417 = vmatpush.msra.mxu0 %v398_v1  ;;  %v393_v8 = vld [vmem:[%s326_s23] sm:$0xff]  ;;  %s566_s29 = sshll.u32 %s385_s2, 4  ;;  %s568_s10 = sshll.u32 %s565_s21, 4  ;;  %s1332_s29 = int_to_ptr.vmem [resolvable:$true] %s566_s29  ;;  %s1334_s10 = int_to_ptr.hbm [resolvable:$true] %s568_s10 }
  0x57   : > { %445 = vmatpush.msra.mxu1 %v424_v6  ;;  %v474_v9 = vsel %vm450_vm2, %v393_v8, 0.0  ;;  %v859_v24 = vld [vmem:[%s1390_s5] ss:$0 sm:$0xff]  ;;  %s764_s15 = sshll.u32 %s1191_s28, 2  ;;  %s550_s22 = scalar_lea.sflag [#allocation4], %s1300_s26 }
  0x58   : > { %418 = vmatpush.msra.mxu0 %v397_v3  ;;  %759 = vmatmul.msk.f32.vlgmr.msra.gmra.mxu1 %vm426_vm1, %v394_v7  ;;  %s1024_s11 = sshra.s32 %s1334_s10, 4  ;;  %s1030_s13 = scalar_lea.hbm %s1391_s6, 64  ;;  %s1025_s11 = int_to_ptr.hbm [resolvable:$true] %s1024_s11 }
  0x59   : > { %475 = vadd.xlane.f32.xlu0 %v474_v9  ;;  %s1026_s14 = scalar_lea.hbm %s1025_s11, 32  ;;  %p1031_p10 = scmp.lt.s32.totalorder %s1025_s11, %s1391_s6 }
  0x5a   : > { %419 = vmatpush.msra.mxu0 %v396_v4  ;;  %p1027_p1 = scmp.ne.s32.totalorder %s1025_s11, %s1026_s14  ;;  %p1032_p11 = scmp.lt.s32.totalorder %s1030_s13, %s1026_s14 }
  0x5b   : > { %758 = vmatmul.msk.f32.vlgmr.msra.gmra.mxu0 %vm400_vm0, %v395_v5 }
  0x5c   : > { %p1028_p4 = pnand %p1027_p1, %p1253_p7  ;;  %p1033_p9 = por %p1032_p11, %p1031_p10 }
  0x5e   : > { %p1029_p8 = pneg %p1028_p4 }
  0x60   : > { %p1034_p2 = pnand %p1033_p9, %p1029_p8 }
  0xcc   : > { %v476_v19 = vpop.xlane.xlu0 %475 }
  0xd5   : > { %v447_v11 = vpop.f32.mrf.mxu1 }
  0xd6   : > { %v478_v12 = vrot.slane %v447_v11, 1  ;;  %v479_v13 = vrot.slane %v447_v11, 2  ;;  %v480_v14 = vrot.slane %v447_v11, 3  ;;  %v481_v18 = vperm.slane %v447_v11, 0 }
  0xd8   : > { %v421_v10 = vpop.f32.mrf.mxu0  ;;  %v482_v15 = vperm.slane %v478_v12, 0  ;;  %v483_v16 = vperm.slane %v479_v13, 0  ;;  %v484_v17 = vperm.slane %v480_v14, 0  ;;  %v489_v23 = vmul.f32 %v481_v18, %v476_v19 }
  0xd9   : > { %469 = vmatpush.msra.mxu2 %v421_v10 }
  0xda   : > { %760 = vmatmul.msk.f32.vlgmr.msra.gmra.mxu2 %vm450_vm2, %v393_v8  ;;  %v490_v20 = vmul.f32 %v482_v15, %v476_v19  ;;  %v491_v21 = vmul.f32 %v483_v16, %v476_v19  ;;  %v492_v22 = vmul.f32 %v484_v17, %v476_v19 }
 0x15d   : > { %v471_v25 = vpop.f32.mrf.mxu2 }
 0x15e   : > { %v493_v26 = vadd.f32 %v489_v23, %v471_v25  ;;  %v494_v27 = vadd.f32 %v490_v20, %v471_v25  ;;  %v495_v28 = vadd.f32 %v491_v21, %v471_v25  ;;  %v496_v29 = vadd.f32 %v492_v22, %v471_v25 }
 0x160   : > { %v501_v30 = vadd.f32 %v859_v24, %v493_v26  ;;  %v502_v31 = vadd.f32 %v859_v24, %v494_v27  ;;  %v503_v32 = vadd.f32 %v859_v24, %v495_v28  ;;  %v504_v33 = vadd.f32 %v859_v24, %v496_v29 }
 0x162   : > { %v505_v34 = vmax.f32 %v501_v30, 0.0  ;;  %v506_v35 = vmax.f32 %v502_v31, 0.0  ;;  %v507_v36 = vmax.f32 %v503_v32, 0.0  ;;  %v508_v37 = vmax.f32 %v504_v33, 0.0 }
 0x164   : > { %509 = vst [vmem:[%s385_s2] sm:$0xff] %v505_v34  ;;  %v513_v38 = vrot.slane %v505_v34, 4  ;;  %v519_v39 = vrot.slane %v506_v35, 4  ;;  %v525_v40 = vrot.slane %v507_v36, 4  ;;  %v531_v41 = vrot.slane %v508_v37, 4 }
 0x165   : > { %510 = vst [vmem:[%s385_s2 + $0x8] sm:$0xff] %v506_v35 }
 0x166   : > { %511 = vst [vmem:[%s385_s2 + $0x10] sm:$0xff] %v507_v36  ;;  %v514_v42 = vadd.f32 %v513_v38, %v505_v34  ;;  %v520_v43 = vadd.f32 %v519_v39, %v506_v35  ;;  %v526_v44 = vadd.f32 %v525_v40, %v507_v36  ;;  %v532_v45 = vadd.f32 %v531_v41, %v508_v37 }
 0x167   : > { %512 = vst [vmem:[%s385_s2 + $0x18] sm:$0xff] %v508_v37 }
 0x168   : > { %v515_v46 = vrot.slane %v514_v42, 2  ;;  %v521_v47 = vrot.slane %v520_v43, 2  ;;  %v527_v48 = vrot.slane %v526_v44, 2  ;;  %v533_v49 = vrot.slane %v532_v45, 2 }
 0x169   : > { %1037 = shalt.err (!%p1034_p2)
}
 0x16a   : > { %s1127_s28 = smov 128   ;;  %s1128_s9 = smov 256   ;;  %v516_v50 = vadd.f32 %v515_v46, %v514_v42  ;;  %v522_v51 = vadd.f32 %v521_v47, %v520_v43  ;;  %v528_v52 = vadd.f32 %v527_v48, %v526_v44  ;;  %v534_v53 = vadd.f32 %v533_v49, %v532_v45 }
 0x16b   : > { %s1129_s19 = smov 8   ;;  %s581_s4 = scalar_lea.hbm %s1392_s7, %s764_s15  ;;  %vm541_vm3 = vcmask 1041409   ;;  %vm543_vm4 = vcmask 1042434   ;;  %vm545_vm5 = vcmask 1043459  }
 0x16c   : > { %783 = dma.vmem_to_hbm [thread:$0]  (%p1253_p7), %s1332_s29, 512, %s1334_s10, %s550_s22, %s1127_s28, %s1128_s9, %s1129_s19   ;;  %v517_v54 = vrot.slane %v516_v50, 1  ;;  %v523_v55 = vrot.slane %v522_v51, 1  ;;  %v529_v56 = vrot.slane %v528_v52, 1  ;;  %v535_v57 = vrot.slane %v534_v53, 1 }
 0x16d   : > { %s392_s21 = scalar_lea.vmem [#allocation12], %s752_s16  ;;  %s585_s29 = sshll.u32 %s581_s4, 4  ;;  %s586_s29 = int_to_ptr.hbm [resolvable:$true] %s585_s29 }
 0x16e   : > { %v518_v58 = vadd.f32 %v517_v54, %v516_v50  ;;  %v524_v59 = vadd.f32 %v523_v55, %v522_v51  ;;  %v530_v60 = vadd.f32 %v529_v56, %v528_v52  ;;  %s583_s2 = sshll.u32 %s392_s21, 4  ;;  %v536_v61 = vadd.f32 %v535_v57, %v534_v53  ;;  %s555_s10 = scalar_lea.sflag [#allocation13], %s1300_s26  ;;  %s584_s2 = int_to_ptr.vmem [resolvable:$true] %s583_s2 }
 0x16f   : > { %s1052_s15 = sshra.s32 %s586_s29, 4  ;;  %s1058_s14 = scalar_lea.hbm %s1392_s7, 8  ;;  %s1053_s15 = int_to_ptr.hbm [resolvable:$true] %s1052_s15 }
 0x170   : > { %v542_v62 = vsel %vm541_vm3, %v524_v59, %v518_v58  ;;  %s1054_s22 = scalar_lea.hbm %s1053_s15, 4  ;;  %p1059_p3 = scmp.lt.s32.totalorder %s1053_s15, %s1392_s7 }
 0x171   : > { %v544_v63 = vsel %vm543_vm4, %v530_v60, %v542_v62  ;;  %p1055_p12 = scmp.ne.s32.totalorder %s1053_s15, %s1054_s22  ;;  %p1060_p5 = scmp.lt.s32.totalorder %s1058_s14, %s1054_s22 }
 0x172   : > { %v546_v0 = vsel %vm545_vm5, %v536_v61, %v544_v63 }
 0x173   : > { %548 = vst [vmem:[%s392_s21] sm:$0xf] %v546_v0  ;;  %p1056_p13 = pnand %p1055_p12, %p1253_p7  ;;  %p1061_p1 = por %p1060_p5, %p1059_p3 }
 0x175   : > { %p1057_p0 = pneg %p1056_p13 }
 0x177   : > { %p1062_p4 = pnand %p1061_p1, %p1057_p0 }
 0x179   : > { %1065 = shalt.err (!%p1062_p4)
}
 0x17a   : > { %784 = dma.vmem_to_hbm [thread:$0]  (%p1253_p7), %s584_s2, 64, %s586_s29, %s555_s10  }
 0x17b PF: > { %s597_s26 = sand.u32 1, %s1108_s24   ;;  %p1411_p8 = scmp.ge.s32.totalorder %s1120_s27, 2 }
 0x17c   : > { %s598_s13 = scalar_lea.sflag [#allocation4], %s597_s26 }
 0x17d   : > { %p805_p10 = pnand %p1411_p8, %p1205_p6 }
 0x17f   : > { %p806_p11 = pneg %p805_p10 }
 0x181   : > { %1099 = dma.done.wait (%p806_p11), %s598_s13, 512  }
 0x182   : > { %1101 = vsyncadd (%p806_p11), %s598_s13, 4294966784  ;;  %s608_s18 = scalar_lea.sflag [#allocation13], %s597_s26 }
 0x183   : > { %1103 = dma.done.wait (%p806_p11), %s608_s18, 64  }
 0x184   : > { %1105 = vsyncadd (%p806_p11), %s608_s18, 4294967232  ;;  %s1412_s27 = sld [smem:[#allocation21_spill]]  ;;  %s1415_s24 = smov %s1112_s25 }
 0x185   : > { %s1413_s30 = sld [smem:[#allocation20_spill]] }
 0x186   : > { %s1414_s26 = sld [smem:[#allocation22_spill]] }
 0x18a   : > { %p28_p7 = scmp.ge.s32.totalorder %s1412_s27, 4  }
 0x18b   : > { %s1416_s25 = smov %s1413_s30 }
 0x18c   :  { %30 = sbr.rel (!%p28_p7) target bundleno = 14 (0xe), region = 131 }
 0x191   :  { %614 = vsyncpa [#allocation3], 1 }
 0x192   :  { %616 = vsyncpa [#allocation3 + $0x1], 1 }
 0x193   :  { %617 = vsyncpa [#allocation6], 1 }
 0x194   :  { %619 = vsyncpa [#allocation6 + $0x1], 1 }
 0x195   :  { %620 = vsyncpa [#allocation9], 1 }
 0x196   :  { %621 = vsyncpa [#allocation4], 1 }
 0x197   :  { %623 = vsyncpa [#allocation4 + $0x1], 1 }
 0x198   :  { %624 = vsyncpa [#allocation13], 1 }
 0x199   :  { %626 = vsyncpa [#allocation13 + $0x1], 1 }

</bundles_post_ra>
